<compile_context>
chip_gen: v5e
topology: v5e:2x2
jax: 0.10.0
libtpu: 0.0.40
codegen_flags: <defaults>
</compile_context>

<pallas_src>
import functools

import jax
import jax.numpy as jnp
from jax.experimental import pallas as pl
from jax.experimental.pallas import tpu as pltpu


def _masked_ce_kernel(logits_ref, target_ref, mask_ref, weight_ref,
                      num_ref, den_ref, *, total_rows, tile_rows):
    x = logits_ref[...].astype(jnp.float32)          # (TB, C) upcast in-VMEM
    t = target_ref[...]                              # (TB, 1) int32
    m = mask_ref[...]                                # (TB, 1) int32 (0/1)
    w = weight_ref[...].astype(jnp.float32)          # (1,  C)

    # Row-wise logsumexp (numerically stable); no full logp materialization.
    mx = jnp.max(x, axis=-1, keepdims=True)                       # (TB, 1)
    sumexp = jnp.sum(jnp.exp(x - mx), axis=-1, keepdims=True)     # (TB, 1)
    lse = mx + jnp.log(sumexp)                                    # (TB, 1)

    # One-hot "gather" of the target logit and its class weight.
    col = jax.lax.broadcasted_iota(jnp.int32, x.shape, 1)         # (TB, C)
    onehot = col == t                                             # (TB, C) bool
    x_t = jnp.sum(jnp.where(onehot, x, 0.0), axis=-1, keepdims=True)   # (TB, 1)
    wt = jnp.sum(jnp.where(onehot, w, 0.0), axis=-1, keepdims=True)    # (TB, 1)
    # NOTE: out-of-range targets give zero one-hot (contribute 0), unlike
    # PyTorch which raises.

    nll = lse - x_t                                               # (TB, 1)

    # Valid = in-range row (guards batch padding of the last tile) AND masked-in.
    row = (pl.program_id(0) * tile_rows
           + jax.lax.broadcasted_iota(jnp.int32, m.shape, 0))
    valid = (row < total_rows) & (m != 0)

    num_t = jnp.sum(jnp.where(valid, wt * nll, 0.0))              # scalar
    den_t = jnp.sum(jnp.where(valid, wt, 0.0))                    # scalar

    # Lane-dense per-tile partials (128-wide unmasked store).
    num_ref[...] = jnp.broadcast_to(num_t, num_ref.shape)
    den_ref[...] = jnp.broadcast_to(den_t, den_ref.shape)


def _pick_tile_rows(batch, n_classes, itemsize):
    """Biggest B-tile that keeps a logits buffer at ~4 MiB (safe on v5e/v6e/v7x)."""
    target_bytes = 4 << 20
    tb = max(8, target_bytes // max(1, n_classes * itemsize))
    tb = min(1024, (tb // 8) * 8)
    if batch <= tb:
        return batch          # single tile; block dim equals full array dim
    return tb                 # multiple of 8; last tile padded (masked in-kernel)


def masked_cross_entropy_loss(logits, target, mask, weight, reduction="mean"):
    """logits: (B, C) float (any dtype), target: (B,) int, mask: (B,) bool,
    weight: (C,) float. Matches the PyTorch module's forward."""
    B, C = logits.shape
    itemsize = jnp.dtype(logits.dtype).itemsize

    tb = _pick_tile_rows(B, C, itemsize)
    num_tiles = pl.cdiv(B, tb)

    target2 = target.astype(jnp.int32).reshape(B, 1)
    mask2 = mask.astype(jnp.int32).reshape(B, 1)
    weight2 = weight.astype(jnp.float32).reshape(1, C)

    tile_bytes = tb * C * itemsize
    vmem_limit = int(min(32 << 20, max(16 << 20, 4 * tile_bytes + (2 << 20))))

    kernel = functools.partial(_masked_ce_kernel, total_rows=B, tile_rows=tb)

    num_out, den_out = pl.pallas_call(
        kernel,
        out_shape=(
            jax.ShapeDtypeStruct((num_tiles, 1, 128), jnp.float32),
            jax.ShapeDtypeStruct((num_tiles, 1, 128), jnp.float32),
        ),
        grid=(num_tiles,),
        in_specs=[
            pl.BlockSpec((tb, C), lambda i: (i, 0)),      # logits, native dtype
            pl.BlockSpec((tb, 1), lambda i: (i, 0)),      # target
            pl.BlockSpec((tb, 1), lambda i: (i, 0)),      # mask
            pl.BlockSpec((1, C), lambda i: (0, 0)),       # weight (replicated)
        ],
        out_specs=(
            pl.BlockSpec((1, 1, 128), lambda i: (i, 0, 0)),
            pl.BlockSpec((1, 1, 128), lambda i: (i, 0, 0)),
        ),
        compiler_params=pltpu.CompilerParams(
            dimension_semantics=("parallel",),
            vmem_limit_bytes=vmem_limit,
        ),
    )(logits, target2, mask2, weight2)

    num = jnp.sum(num_out[:, 0, 0])
    den = jnp.sum(den_out[:, 0, 0])

    if reduction == "mean":
        return num / den
    elif reduction == "sum":
        return num
    else:
        raise NotImplementedError(
            "only 'mean' and 'sum' reductions are implemented")


def _reference(logits, target, mask, weight):
    # Plain-JAX reference of the same math for a sanity check.
    logp = jax.nn.log_softmax(logits.astype(jnp.float32), axis=-1)
    nll = -jnp.take_along_axis(logp, target[:, None].astype(jnp.int32), axis=-1)[:, 0]
    wt = weight[target]
    m = mask.astype(jnp.float32)
    return jnp.sum(m * wt * nll) / jnp.sum(m * wt)


if __name__ == "__main__":
    key = jax.random.PRNGKey(0)
    k1, k2, k3, k4 = jax.random.split(key, 4)

    B, C = 8, 16
    # Narrow storage dtype on purpose: the kernel reads bf16 from HBM and
    # upcasts to f32 in VMEM (all in-kernel math stays f32 -> v5e-safe).
    logits = jax.random.normal(k1, (B, C), dtype=jnp.float32).astype(jnp.bfloat16)
    target = jax.random.randint(k2, (B,), 0, C, dtype=jnp.int32)
    mask = jax.random.uniform(k3, (B,)) > 0.4
    mask = mask.at[0].set(True)  # guarantee at least one selected row
    weight = jax.random.uniform(k4, (C,), minval=0.5, maxval=1.5, dtype=jnp.float32)

    loss_fn = jax.jit(masked_cross_entropy_loss, static_argnames=("reduction",))
    loss = loss_fn(logits, target, mask, weight)
    loss = jax.block_until_ready(loss)

    ref = _reference(logits, target, mask, weight)
    assert jnp.allclose(loss, ref, rtol=1e-5, atol=1e-5), (loss, ref)

    print("KERNEL_OK")
</pallas_src>

<mosaic_0001>
module attributes {stable_mosaic.version = 11 : i64} {
  func.func @_masked_ce_kernel(%arg0: i32, %arg1: memref<8x16xbf16, #tpu.memory_space<vmem>>, %arg2: memref<8x1xi32, #tpu.memory_space<vmem>>, %arg3: memref<8x1xi32, #tpu.memory_space<vmem>>, %arg4: memref<1x16xf32, #tpu.memory_space<vmem>>, %arg5: memref<1x1x128xf32, #tpu.memory_space<vmem>>, %arg6: memref<1x1x128xf32, #tpu.memory_space<vmem>>) attributes {dimension_semantics = [#tpu.dimension_semantics<parallel>], iteration_bounds = array<i64: 1>, scalar_prefetch = 0 : i64, scratch_operands = 0 : i64, tpu.core_type = #tpu.core_type<tc>, window_params = [{transform_indices = @transform_0, window_bounds = array<i64: 8, 16>}, {transform_indices = @transform_1, window_bounds = array<i64: 8, 1>}, {transform_indices = @transform_2, window_bounds = array<i64: 8, 1>}, {pipeline_mode = #tpu.pipeline_mode<synchronous>, transform_indices = @transform_3, window_bounds = array<i64: 1, 16>}, {transform_indices = @transform_4, window_bounds = array<i64: 1, 1, 128>}, {transform_indices = @transform_5, window_bounds = array<i64: 1, 1, 128>}]} {
    %c0 = arith.constant 0 : index
    %c0_0 = arith.constant 0 : index
    %0 = vector.load %arg1[%c0, %c0_0] : memref<8x16xbf16, #tpu.memory_space<vmem>>, vector<8x16xbf16>
    %1 = arith.extf %0 : vector<8x16xbf16> to vector<8x16xf32>
    %c0_1 = arith.constant 0 : index
    %c0_2 = arith.constant 0 : index
    %2 = vector.load %arg2[%c0_1, %c0_2] : memref<8x1xi32, #tpu.memory_space<vmem>>, vector<8x1xi32>
    %c0_3 = arith.constant 0 : index
    %c0_4 = arith.constant 0 : index
    %3 = vector.load %arg3[%c0_3, %c0_4] : memref<8x1xi32, #tpu.memory_space<vmem>>, vector<8x1xi32>
    %c0_5 = arith.constant 0 : index
    %c0_6 = arith.constant 0 : index
    %4 = vector.load %arg4[%c0_5, %c0_6] : memref<1x16xf32, #tpu.memory_space<vmem>>, vector<1x16xf32>
    %cst = arith.constant dense<0xFF800000> : vector<8xf32>
    %5 = vector.multi_reduction <maximumf>, %1, %cst [1] : vector<8x16xf32> to vector<8xf32>
    %6 = vector.shape_cast %5 : vector<8xf32> to vector<8x1xf32>
    %7 = vector.broadcast %6 : vector<8x1xf32> to vector<8x16xf32>
    %8 = arith.subf %1, %7 : vector<8x16xf32>
    %9 = math.exp %8 : vector<8x16xf32>
    %cst_7 = arith.constant dense<0.000000e+00> : vector<8xf32>
    %10 = vector.multi_reduction <add>, %9, %cst_7 [1] : vector<8x16xf32> to vector<8xf32>
    %11 = vector.shape_cast %10 : vector<8xf32> to vector<8x1xf32>
    %12 = math.log %11 : vector<8x1xf32>
    %13 = arith.addf %6, %12 : vector<8x1xf32>
    %14 = tpu.iota {dimensions = array<i32: 1>} : vector<8x16xi32>
    %15 = vector.broadcast %2 : vector<8x1xi32> to vector<8x16xi32>
    %16 = arith.cmpi eq, %14, %15 : vector<8x16xi32>
    %cst_8 = arith.constant 0.000000e+00 : f32
    %17 = vector.broadcast %cst_8 : f32 to vector<8x16xf32>
    %18 = arith.select %16, %1, %17 : vector<8x16xi1>, vector<8x16xf32>
    %cst_9 = arith.constant dense<0.000000e+00> : vector<8xf32>
    %19 = vector.multi_reduction <add>, %18, %cst_9 [1] : vector<8x16xf32> to vector<8xf32>
    %20 = vector.shape_cast %19 : vector<8xf32> to vector<8x1xf32>
    %cst_10 = arith.constant 0.000000e+00 : f32
    %21 = vector.shape_cast %4 : vector<1x16xf32> to vector<1x16xf32>
    %22 = vector.broadcast %21 : vector<1x16xf32> to vector<8x16xf32>
    %23 = vector.broadcast %cst_10 : f32 to vector<8x16xf32>
    %24 = arith.select %16, %22, %23 : vector<8x16xi1>, vector<8x16xf32>
    %cst_11 = arith.constant dense<0.000000e+00> : vector<8xf32>
    %25 = vector.multi_reduction <add>, %24, %cst_11 [1] : vector<8x16xf32> to vector<8xf32>
    %26 = vector.shape_cast %25 : vector<8xf32> to vector<8x1xf32>
    %27 = arith.subf %13, %20 : vector<8x1xf32>
    %c8_i32 = arith.constant 8 : i32
    %28 = arith.muli %arg0, %c8_i32 : i32
    %29 = tpu.iota {dimensions = array<i32: 0>} : vector<8x1xi32>
    %30 = vector.broadcast %28 : i32 to vector<8x1xi32>
    %31 = arith.addi %30, %29 : vector<8x1xi32>
    %c8_i32_12 = arith.constant 8 : i32
    %32 = vector.broadcast %c8_i32_12 : i32 to vector<8x1xi32>
    %33 = arith.cmpi slt, %31, %32 : vector<8x1xi32>
    %c0_i32 = arith.constant 0 : i32
    %34 = vector.broadcast %c0_i32 : i32 to vector<8x1xi32>
    %35 = arith.cmpi ne, %3, %34 : vector<8x1xi32>
    %36 = arith.andi %33, %35 : vector<8x1xi1>
    %37 = arith.mulf %26, %27 : vector<8x1xf32>
    %cst_13 = arith.constant 0.000000e+00 : f32
    %38 = vector.broadcast %cst_13 : f32 to vector<8x1xf32>
    %39 = arith.select %36, %37, %38 : vector<8x1xi1>, vector<8x1xf32>
    %40 = vector.shape_cast %39 : vector<8x1xf32> to vector<1x8x1xf32>
    %cst_14 = arith.constant dense<0.000000e+00> : vector<1xf32>
    %41 = vector.multi_reduction <add>, %40, %cst_14 [1, 2] : vector<1x8x1xf32> to vector<1xf32>
    %42 = vector.shape_cast %41 : vector<1xf32> to vector<1x1x1xf32>
    %43 = vector.extract %42[0, 0, 0] : f32 from vector<1x1x1xf32>
    %cst_15 = arith.constant 0.000000e+00 : f32
    %44 = vector.broadcast %cst_15 : f32 to vector<8x1xf32>
    %45 = arith.select %36, %26, %44 : vector<8x1xi1>, vector<8x1xf32>
    %46 = vector.shape_cast %45 : vector<8x1xf32> to vector<1x8x1xf32>
    %cst_16 = arith.constant dense<0.000000e+00> : vector<1xf32>
    %47 = vector.multi_reduction <add>, %46, %cst_16 [1, 2] : vector<1x8x1xf32> to vector<1xf32>
    %48 = vector.shape_cast %47 : vector<1xf32> to vector<1x1x1xf32>
    %49 = vector.extract %48[0, 0, 0] : f32 from vector<1x1x1xf32>
    %50 = vector.broadcast %43 : f32 to vector<1x1x128xf32>
    %c0_17 = arith.constant 0 : index
    %c0_18 = arith.constant 0 : index
    %c0_19 = arith.constant 0 : index
    %51 = vector.load %arg5[%c0_17, %c0_18, %c0_19] : memref<1x1x128xf32, #tpu.memory_space<vmem>>, vector<1x1x128xf32>
    tpu.vector_store %arg5[%c0_17, %c0_18, %c0_19], %50 {strides = array<i32>} : memref<1x1x128xf32, #tpu.memory_space<vmem>>, vector<1x1x128xf32>,
    %52 = vector.broadcast %49 : f32 to vector<1x1x128xf32>
    %c0_20 = arith.constant 0 : index
    %c0_21 = arith.constant 0 : index
    %c0_22 = arith.constant 0 : index
    %53 = vector.load %arg6[%c0_20, %c0_21, %c0_22] : memref<1x1x128xf32, #tpu.memory_space<vmem>>, vector<1x1x128xf32>
    tpu.vector_store %arg6[%c0_20, %c0_21, %c0_22], %52 {strides = array<i32>} : memref<1x1x128xf32, #tpu.memory_space<vmem>>, vector<1x1x128xf32>,
    return
  }
  func.func @transform_0(%arg0: i32) -> (i32, i32) {
    %c0_i32 = arith.constant 0 : i32
    %c0_i32_0 = arith.constant 0 : i32
    return %arg0, %c0_i32 : i32, i32
  }
  func.func @transform_1(%arg0: i32) -> (i32, i32) {
    %c0_i32 = arith.constant 0 : i32
    %c0_i32_0 = arith.constant 0 : i32
    return %arg0, %c0_i32 : i32, i32
  }
  func.func @transform_2(%arg0: i32) -> (i32, i32) {
    %c0_i32 = arith.constant 0 : i32
    %c0_i32_0 = arith.constant 0 : i32
    return %arg0, %c0_i32 : i32, i32
  }
  func.func @transform_3(%arg0: i32) -> (i32, i32) {
    %c0_i32 = arith.constant 0 : i32
    %c0_i32_0 = arith.constant 0 : i32
    %c0_i32_1 = arith.constant 0 : i32
    return %c0_i32, %c0_i32_0 : i32, i32
  }
  func.func @transform_4(%arg0: i32) -> (i32, i32, i32) {
    %c0_i32 = arith.constant 0 : i32
    %c0_i32_0 = arith.constant 0 : i32
    %c0_i32_1 = arith.constant 0 : i32
    return %arg0, %c0_i32, %c0_i32_0 : i32, i32, i32
  }
  func.func @transform_5(%arg0: i32) -> (i32, i32, i32) {
    %c0_i32 = arith.constant 0 : i32
    %c0_i32_0 = arith.constant 0 : i32
    %c0_i32_1 = arith.constant 0 : i32
    return %arg0, %c0_i32, %c0_i32_0 : i32, i32, i32
  }
}

</mosaic_0001>

<bundles_post_ra>
// kernel: masked_cross_entropy_loss.1
= control target key start
LH: loop header
LB: loop body
LE: loop exit
PB: predicated region body
PF: predicated region fallthrough
CT: control target
= control target key end

     0   :  { %vm24_vm0 = vcmask 130048   ;;  %v110_v1 = vmov 0   ;;  %v37_v10 = vlaneseq  ;;  %vm65_vm3 = vcmask 7168   ;;  %s163_s0 = inlined_call_operand.vmem [shape: bf16[8,16], index: 0, kind: input, shape index: {}]   ;;  %s164_s3 = inlined_call_operand.vmem [shape: f32[1,16], index: 3, kind: input, shape index: {}]   ;;  %s165_s1 = inlined_call_operand.vmem [shape: s32[8,1], index: 1, kind: input, shape index: {}]   ;;  %s166_s2 = inlined_call_operand.vmem [shape: s32[8,1], index: 2, kind: input, shape index: {}]   ;;  %s167_s4 = inlined_call_operand.vmem [shape: f32[1,1,128], index: 4, kind: output, shape index: {0}]   ;;  %s168_s5 = inlined_call_operand.vmem [shape: f32[1,1,128], index: 5, kind: output, shape index: {1}]  }
   0x1   :  { %v19_v0 = vld [vmem:[%s163_s0] sm:$0xf]  ;;  %104 = vset.pattern.permute.xlu0 %v110_v1 }
   0x2   :  { %v20_v2 = vunpack.c.l.bf16 %v19_v0  ;;  %v21_v4 = vld [vmem:[%s165_s1] sm:$0xff]  ;;  %v38_v11 = vand.u32 127, %v37_v10 }
   0x3   :  { %v105_v12 = vld [vmem:[%s164_s3] ss:$0 sm:$0xff] }
   0x4   :  { %v25_v3 = vsel %vm24_vm0, %v20_v2, -inf  ;;  %v22_v19 = vld [vmem:[%s166_s2] sm:$0xff] }
   0x5   :  { %26 = vmax.xlane.f32.xlu0 %v25_v3  ;;  %vm61_vm2 = vcmp.ne.s32.totalorder %v22_v19, 0 }
  0x19   :  { %40 = vperm.xlu0 %104, %v21_v4  }
  0x78   :  { %v27_v5 = vpop.xlane.xlu0 %26 }
  0x79   :  { %v28_v6 = vsub.f32 %v20_v2, %v27_v5 }
  0x7b   :  { %v29_v7 = vmul.f32 1.442695, %v28_v6 }
  0x7d   :  { %106 = vpow2.f32 %v29_v7 }
  0x83   :  { %v107_v8 = vpop.eup %106 }
  0x84   :  { %v31_v9 = vsel %vm24_vm0, %v107_v8, 0.0 }
  0x85   :  { %32 = vadd.xlane.f32.xlu1 %v31_v9 }
  0x8b   :  { %v41_v13 = vpop.permute.xlu0 %40 }
  0x8c   :  { %vm42_vm1 = vcmp.eq.s32.totalorder %v38_v11, %v41_v13 }
  0x8d   :  { %v50_v14 = vsel %vm42_vm1, %v105_v12, 0.0  ;;  %v43_v15 = vsel %vm42_vm1, %v20_v2, 0.0 }
  0x8e   :  { %v51_v16 = vsel %vm24_vm0, %v50_v14, 0.0  ;;  %v44_v17 = vsel %vm24_vm0, %v43_v15, 0.0 }
  0x8f   :  { %52 = vadd.xlane.f32.xlu2 %v51_v16  ;;  %45 = vadd.xlane.f32.xlu1 %v44_v17 }
  0xf8   :  { %v33_v18 = vpop.xlane.xlu1 %32 }
  0xf9   :  { %108 = vlog2.f32 %v33_v18 }
  0xff   :  { %v109_v20 = vpop.eup %108 }
 0x100   :  { %v35_v21 = vmul.f32 0.6931472, %v109_v20 }
 0x102   :  { %v53_v22 = vpop.xlane.xlu2 %52  ;;  %v36_v23 = vadd.f32 %v35_v21, %v27_v5  ;;  %v46_v24 = vpop.xlane.xlu1 %45 }
 0x103   :  { %v76_v25 = vsel %vm61_vm2, %v53_v22, 0.0 }
 0x104   :  { %v54_v26 = vsub.f32 %v36_v23, %v46_v24  ;;  %v77_v27 = vsel %vm65_vm3, %v76_v25, 0.0 }
 0x105   :  { %78 = vadd.xlane.f32.xlu1 %v77_v27 }
 0x106   :  { %v63_v28 = vmul.f32 %v54_v26, %v53_v22 }
 0x108   :  { %v64_v29 = vsel %vm61_vm2, %v63_v28, 0.0 }
 0x109   :  { %v66_v30 = vsel %vm65_vm3, %v64_v29, 0.0 }
 0x10a   :  { %67 = vadd.xlane.f32.xlu2 %v66_v30 }
 0x178   :  { %v79_v31 = vpop.xlane.xlu1 %78 }
 0x179   :  { %v80_v32 = vrot.slane %v79_v31, 4 }
 0x17b   :  { %v81_v33 = vadd.f32 %v80_v32, %v79_v31 }
 0x17d   :  { %v82_v34 = vrot.slane %v81_v33, 2  ;;  %v68_v35 = vpop.xlane.xlu2 %67 }
 0x17e   :  { %v69_v36 = vrot.slane %v68_v35, 4 }
 0x17f   :  { %v83_v38 = vadd.f32 %v82_v34, %v81_v33 }
 0x180   :  { %v70_v37 = vadd.f32 %v69_v36, %v68_v35 }
 0x181   :  { %v84_v41 = vrot.slane %v83_v38, 1 }
 0x182   :  { %v71_v39 = vrot.slane %v70_v37, 2 }
 0x183   :  { %v85_v44 = vadd.f32 %v84_v41, %v83_v38 }
 0x184   :  { %v72_v40 = vadd.f32 %v71_v39, %v70_v37 }
 0x186   :  { %v73_v42 = vrot.slane %v72_v40, 1 }
 0x188   :  { %v74_v43 = vadd.f32 %v73_v42, %v72_v40 }
 0x18a   :  { %99 = vpush %v74_v43 }
 0x18b   :  { %101 = vpush %v85_v44 }
 0x1bb   :  { %s100_s2 = spop %99 }
 0x1bc   :  { %v87_v45 = vstv %s100_s2  ;;  %s102_s3 = spop %101 }
 0x1bd   :  { %88 = vst [vmem:[%s167_s4] sm:$0x1] %v87_v45  ;;  %v89_v46 = vstv %s102_s3 }
 0x1be   :  { %90 = vst [vmem:[%s168_s5] sm:$0x1] %v89_v46 }

</bundles_post_ra>
